<compile_context>
chip_gen: v7x
topology: tpu7x:2x2x1
jax: 0.10.0
libtpu: 0.0.40
codegen_flags: <defaults>
</compile_context>

<pallas_src>
import jax
import jax.numpy as jnp
from jax.experimental import pallas as pl
from jax.experimental.pallas import tpu as pltpu

F_IN, F_PAD, H1, H2, F_OUT = 20, 32, 64, 32, 16
PACK = 128 // F_OUT            # 8 batch rows packed per lane-dense row
MAX_TILE_B = 4096              # batch rows per grid step (multiple of 128)


def _round_up(n, m):
    return ((n + m - 1) // m) * m


def _mlp_kernel(x_ref, w1_ref, b1_ref, w2_ref, b2_ref, w3_ref, b3_ref, o_ref):
    # Layer 1: Linear(20->64) + ReLU   (packed: [R, 256] @ [256, 512])
    h = jnp.dot(x_ref[...], w1_ref[...], preferred_element_type=jnp.float32)
    h = jnp.maximum(h + b1_ref[...], 0.0).astype(jnp.bfloat16)
    # Layer 2: Linear(64->32) + ReLU   (packed: [R, 512] @ [512, 256])
    h = jnp.dot(h, w2_ref[...], preferred_element_type=jnp.float32)
    h = jnp.maximum(h + b2_ref[...], 0.0).astype(jnp.bfloat16)
    # Layer 3: Linear(32->16)          (packed: [R, 256] @ [256, 128])
    h = jnp.dot(h, w3_ref[...], preferred_element_type=jnp.float32)
    o_ref[...] = (h + b3_ref[...]).astype(o_ref.dtype)


def init_params(key):
    """PyTorch-default-style Linear init (uniform +/- 1/sqrt(fan_in)).
    Weights stored as [in, out] (transposed vs. torch's [out, in])."""
    def linear(k, fan_in, fan_out):
        kw, kb = jax.random.split(k)
        bound = 1.0 / jnp.sqrt(fan_in)
        w = jax.random.uniform(kw, (fan_in, fan_out), jnp.float32, -bound, bound)
        b = jax.random.uniform(kb, (1, fan_out), jnp.float32, -bound, bound)
        return w, b

    k1, k2, k3 = jax.random.split(key, 3)
    w1, b1 = linear(k1, F_IN, H1)
    w2, b2 = linear(k2, H1, H2)
    w3, b3 = linear(k3, H2, F_OUT)
    return {"w1": w1, "b1": b1, "w2": w2, "b2": b2, "w3": w3, "b3": b3}


def pack_params(params):
    """One-time prep: zero-pad layer-1 K to 32, cast weights to bf16 and expand
    them PACK-way block-diagonally so 8 batch rows share each lane row.
    The zero blocks are numerically inert (adding exact zeros)."""
    def block_diag(w):
        fi, fo = w.shape
        out = jnp.zeros((PACK * fi, PACK * fo), w.dtype)
        for j in range(PACK):
            out = out.at[j * fi:(j + 1) * fi, j * fo:(j + 1) * fo].set(w)
        return out

    w1p = jnp.pad(params["w1"], ((0, F_PAD - F_IN), (0, 0)))
    return dict(
        w1=block_diag(w1p).astype(jnp.bfloat16),
        w2=block_diag(params["w2"]).astype(jnp.bfloat16),
        w3=block_diag(params["w3"]).astype(jnp.bfloat16),
        b1=jnp.tile(params["b1"].astype(jnp.float32), (1, PACK)),
        b2=jnp.tile(params["b2"].astype(jnp.float32), (1, PACK)),
        b3=jnp.tile(params["b3"].astype(jnp.float32), (1, PACK)),
    )


def nset_mlp_forward(x, packed):
    """x: [B, 20] float32. packed: output of pack_params. Returns [B, 16] f32."""
    B = x.shape[0]
    # Tile granularity of 128 batch rows keeps bf16/f32 (16,128)/(8,128)
    # tiling happy; cap at MAX_TILE_B for the pipelined large-batch case.
    tile_b = min(MAX_TILE_B, _round_up(B, 16 * PACK))
    b_pad = _round_up(B, tile_b)
    rows, tile_rows = b_pad // PACK, tile_b // PACK

    # Pad batch + feature dims, cast to bf16, pack 8 rows per lane row (free
    # row-major reshape).
    xp = jnp.pad(x.astype(jnp.float32),
                 ((0, b_pad - B), (0, F_PAD - F_IN))).astype(jnp.bfloat16)
    xp = xp.reshape(rows, PACK * F_PAD)

    flops = 2 * rows * (PACK * F_PAD * PACK * H1
                        + PACK * H1 * PACK * H2
                        + PACK * H2 * PACK * F_OUT)
    bytes_accessed = (xp.size * 2 + rows * PACK * F_OUT * 4
                      + sum(int(v.size) * v.dtype.itemsize
                            for v in packed.values()))

    def resident(shape):          # weights/biases: same block every grid step
        return pl.BlockSpec(shape, lambda i: (0, 0))

    out = pl.pallas_call(
        _mlp_kernel,
        out_shape=jax.ShapeDtypeStruct((rows, PACK * F_OUT), jnp.float32),
        grid=(b_pad // tile_b,),
        in_specs=[
            pl.BlockSpec((tile_rows, PACK * F_PAD), lambda i: (i, 0)),  # x
            resident((PACK * F_PAD, PACK * H1)),                        # w1
            resident((1, PACK * H1)),                                   # b1
            resident((PACK * H1, PACK * H2)),                           # w2
            resident((1, PACK * H2)),                                   # b2
            resident((PACK * H2, PACK * F_OUT)),                        # w3
            resident((1, PACK * F_OUT)),                                # b3
        ],
        out_specs=pl.BlockSpec((tile_rows, PACK * F_OUT), lambda i: (i, 0)),
        compiler_params=pltpu.CompilerParams(
            dimension_semantics=("parallel",),       # 2 TCs on v7x
            vmem_limit_bytes=32 * 1024 * 1024),      # safe on v5e/v6e/v7x
        cost_estimate=pl.CostEstimate(
            flops=flops, transcendentals=0, bytes_accessed=bytes_accessed),
    )(xp, packed["w1"], packed["b1"], packed["w2"], packed["b2"],
      packed["w3"], packed["b3"])

    # Free row-major unpack back to [B, 16].
    return out.reshape(b_pad, F_OUT)[:B]


def _reference(x, p):
    """Pure-JAX reference with matching bf16-operand / f32-accumulate numerics."""
    bf, f32 = jnp.bfloat16, jnp.float32
    h = jnp.dot(x.astype(bf), p["w1"].astype(bf), preferred_element_type=f32)
    h = jnp.maximum(h + p["b1"], 0.0).astype(bf)
    h = jnp.dot(h, p["w2"].astype(bf), preferred_element_type=f32)
    h = jnp.maximum(h + p["b2"], 0.0).astype(bf)
    h = jnp.dot(h, p["w3"].astype(bf), preferred_element_type=f32)
    return h + p["b3"]


if __name__ == "__main__":
    key = jax.random.PRNGKey(0)
    kp, kx = jax.random.split(key)
    params = init_params(kp)
    packed = pack_params(params)

    # Module is defined for inputs of shape (N, 20); small batch of 2.
    x = jax.random.uniform(kx, (2, F_IN), jnp.float32)

    out = jax.block_until_ready(nset_mlp_forward(x, packed))
    ref = _reference(x, params)

    assert out.shape == (2, F_OUT), out.shape
    assert jnp.allclose(out, ref, atol=2e-3, rtol=2e-3), (
        "mismatch vs. pure-JAX reference")
    print("KERNEL_OK")
</pallas_src>

<mosaic_0001>
module attributes {stable_mosaic.version = 11 : i64} {
  func.func @_mlp_kernel(%arg0: i32, %arg1: memref<16x256xbf16, #tpu.memory_space<vmem>>, %arg2: memref<256x512xbf16, #tpu.memory_space<vmem>>, %arg3: memref<1x512xf32, #tpu.memory_space<vmem>>, %arg4: memref<512x256xbf16, #tpu.memory_space<vmem>>, %arg5: memref<1x256xf32, #tpu.memory_space<vmem>>, %arg6: memref<256x128xbf16, #tpu.memory_space<vmem>>, %arg7: memref<1x128xf32, #tpu.memory_space<vmem>>, %arg8: memref<16x128xf32, #tpu.memory_space<vmem>>) attributes {dimension_semantics = [#tpu.dimension_semantics<parallel>], iteration_bounds = array<i64: 1>, scalar_prefetch = 0 : i64, scratch_operands = 0 : i64, tpu.core_type = #tpu.core_type<tc>, window_params = [{transform_indices = @transform_0, window_bounds = array<i64: 16, 256>}, {pipeline_mode = #tpu.pipeline_mode<synchronous>, transform_indices = @transform_1, window_bounds = array<i64: 256, 512>}, {pipeline_mode = #tpu.pipeline_mode<synchronous>, transform_indices = @transform_2, window_bounds = array<i64: 1, 512>}, {pipeline_mode = #tpu.pipeline_mode<synchronous>, transform_indices = @transform_3, window_bounds = array<i64: 512, 256>}, {pipeline_mode = #tpu.pipeline_mode<synchronous>, transform_indices = @transform_4, window_bounds = array<i64: 1, 256>}, {pipeline_mode = #tpu.pipeline_mode<synchronous>, transform_indices = @transform_5, window_bounds = array<i64: 256, 128>}, {pipeline_mode = #tpu.pipeline_mode<synchronous>, transform_indices = @transform_6, window_bounds = array<i64: 1, 128>}, {transform_indices = @transform_7, window_bounds = array<i64: 16, 128>}]} {
    %c0 = arith.constant 0 : index
    %c0_0 = arith.constant 0 : index
    %0 = vector.load %arg1[%c0, %c0_0] : memref<16x256xbf16, #tpu.memory_space<vmem>>, vector<16x256xbf16>
    %c0_1 = arith.constant 0 : index
    %c0_2 = arith.constant 0 : index
    %1 = vector.load %arg2[%c0_1, %c0_2] : memref<256x512xbf16, #tpu.memory_space<vmem>>, vector<256x512xbf16>
    %cst = arith.constant dense<0.000000e+00> : vector<16x512xf32>
    %2 = tpu.matmul %0, %1, %cst {dimension_numbers = #tpu.dot_dimension_numbers<[1], [0], [0], [1], [0, 0, 1, 1], [], []>} : vector<16x256xbf16>, vector<256x512xbf16>, vector<16x512xf32> -> vector<16x512xf32>
    %c0_3 = arith.constant 0 : index
    %c0_4 = arith.constant 0 : index
    %3 = vector.load %arg3[%c0_3, %c0_4] : memref<1x512xf32, #tpu.memory_space<vmem>>, vector<1x512xf32>
    %4 = vector.broadcast %3 : vector<1x512xf32> to vector<16x512xf32>
    %5 = arith.addf %2, %4 : vector<16x512xf32>
    %cst_5 = arith.constant 0.000000e+00 : f32
    %6 = vector.broadcast %cst_5 : f32 to vector<16x512xf32>
    %7 = arith.maximumf %5, %6 : vector<16x512xf32>
    %8 = arith.truncf %7 : vector<16x512xf32> to vector<16x512xbf16>
    %c0_6 = arith.constant 0 : index
    %c0_7 = arith.constant 0 : index
    %9 = vector.load %arg4[%c0_6, %c0_7] : memref<512x256xbf16, #tpu.memory_space<vmem>>, vector<512x256xbf16>
    %cst_8 = arith.constant dense<0.000000e+00> : vector<16x256xf32>
    %10 = tpu.matmul %8, %9, %cst_8 {dimension_numbers = #tpu.dot_dimension_numbers<[1], [0], [0], [1], [0, 0, 1, 1], [], []>} : vector<16x512xbf16>, vector<512x256xbf16>, vector<16x256xf32> -> vector<16x256xf32>
    %c0_9 = arith.constant 0 : index
    %c0_10 = arith.constant 0 : index
    %11 = vector.load %arg5[%c0_9, %c0_10] : memref<1x256xf32, #tpu.memory_space<vmem>>, vector<1x256xf32>
    %12 = vector.broadcast %11 : vector<1x256xf32> to vector<16x256xf32>
    %13 = arith.addf %10, %12 : vector<16x256xf32>
    %cst_11 = arith.constant 0.000000e+00 : f32
    %14 = vector.broadcast %cst_11 : f32 to vector<16x256xf32>
    %15 = arith.maximumf %13, %14 : vector<16x256xf32>
    %16 = arith.truncf %15 : vector<16x256xf32> to vector<16x256xbf16>
    %c0_12 = arith.constant 0 : index
    %c0_13 = arith.constant 0 : index
    %17 = vector.load %arg6[%c0_12, %c0_13] : memref<256x128xbf16, #tpu.memory_space<vmem>>, vector<256x128xbf16>
    %cst_14 = arith.constant dense<0.000000e+00> : vector<16x128xf32>
    %18 = tpu.matmul %16, %17, %cst_14 {dimension_numbers = #tpu.dot_dimension_numbers<[1], [0], [0], [1], [0, 0, 1, 1], [], []>} : vector<16x256xbf16>, vector<256x128xbf16>, vector<16x128xf32> -> vector<16x128xf32>
    %c0_15 = arith.constant 0 : index
    %c0_16 = arith.constant 0 : index
    %19 = vector.load %arg7[%c0_15, %c0_16] : memref<1x128xf32, #tpu.memory_space<vmem>>, vector<1x128xf32>
    %20 = vector.broadcast %19 : vector<1x128xf32> to vector<16x128xf32>
    %21 = arith.addf %18, %20 : vector<16x128xf32>
    %c0_17 = arith.constant 0 : index
    %c0_18 = arith.constant 0 : index
    %22 = vector.load %arg8[%c0_17, %c0_18] : memref<16x128xf32, #tpu.memory_space<vmem>>, vector<16x128xf32>
    tpu.vector_store %arg8[%c0_17, %c0_18], %21 {strides = array<i32>} : memref<16x128xf32, #tpu.memory_space<vmem>>, vector<16x128xf32>,
    return
  }
  func.func @transform_0(%arg0: i32) -> (i32, i32) {
    %c0_i32 = arith.constant 0 : i32
    %c0_i32_0 = arith.constant 0 : i32
    return %arg0, %c0_i32 : i32, i32
  }
  func.func @transform_1(%arg0: i32) -> (i32, i32) {
    %c0_i32 = arith.constant 0 : i32
    %c0_i32_0 = arith.constant 0 : i32
    %c0_i32_1 = arith.constant 0 : i32
    return %c0_i32, %c0_i32_0 : i32, i32
  }
  func.func @transform_2(%arg0: i32) -> (i32, i32) {
    %c0_i32 = arith.constant 0 : i32
    %c0_i32_0 = arith.constant 0 : i32
    %c0_i32_1 = arith.constant 0 : i32
    return %c0_i32, %c0_i32_0 : i32, i32
  }
  func.func @transform_3(%arg0: i32) -> (i32, i32) {
    %c0_i32 = arith.constant 0 : i32
    %c0_i32_0 = arith.constant 0 : i32
    %c0_i32_1 = arith.constant 0 : i32
    return %c0_i32, %c0_i32_0 : i32, i32
  }
  func.func @transform_4(%arg0: i32) -> (i32, i32) {
    %c0_i32 = arith.constant 0 : i32
    %c0_i32_0 = arith.constant 0 : i32
    %c0_i32_1 = arith.constant 0 : i32
    return %c0_i32, %c0_i32_0 : i32, i32
  }
  func.func @transform_5(%arg0: i32) -> (i32, i32) {
    %c0_i32 = arith.constant 0 : i32
    %c0_i32_0 = arith.constant 0 : i32
    %c0_i32_1 = arith.constant 0 : i32
    return %c0_i32, %c0_i32_0 : i32, i32
  }
  func.func @transform_6(%arg0: i32) -> (i32, i32) {
    %c0_i32 = arith.constant 0 : i32
    %c0_i32_0 = arith.constant 0 : i32
    %c0_i32_1 = arith.constant 0 : i32
    return %c0_i32, %c0_i32_0 : i32, i32
  }
  func.func @transform_7(%arg0: i32) -> (i32, i32) {
    %c0_i32 = arith.constant 0 : i32
    %c0_i32_0 = arith.constant 0 : i32
    return %arg0, %c0_i32 : i32, i32
  }
}

</mosaic_0001>

<bundles_post_ra>
// kernel: tpu_custom_call.1
= control target key start
LH: loop header
LB: loop body
LE: loop exit
PB: predicated region body
PF: predicated region fallthrough
CT: control target
= control target key end

     0   :  { %12 = vsyncpa [#allocation3], 0  ;;  %s1965_s0 = inlined_call_operand.hbm [shape: bf16[16,256], index: 0, kind: input, shape index: {}]   ;;  %s1966_s1 = inlined_call_operand.hbm [shape: bf16[256,512], index: 1, kind: input, shape index: {}]   ;;  %s1967_s2 = inlined_call_operand.vmem [shape: f32[1,512], index: 2, kind: input, shape index: {}]   ;;  %s1968_s3 = inlined_call_operand.hbm [shape: bf16[512,256], index: 3, kind: input, shape index: {}]   ;;  %s1969_s4 = inlined_call_operand.vmem [shape: f32[1,256], index: 4, kind: input, shape index: {}]   ;;  %s1970_s5 = inlined_call_operand.hbm [shape: bf16[256,128], index: 5, kind: input, shape index: {}]   ;;  %s1971_s6 = inlined_call_operand.vmem [shape: f32[1,128], index: 6, kind: input, shape index: {}]   ;;  %s1972_s7 = inlined_call_operand.hbm [shape: f32[16,128], index: 7, kind: output, shape index: {}]  }
   0x1   :  { %13 = vsyncpa [#allocation6], 0 }
   0x2   :  { %14 = vsyncpa [#allocation9], 0 }
   0x3   :  { %15 = vsyncpa [#allocation4], 0  ;;  %s1801_s24 = smov [#allocation5]   ;;  %s1683_s28 = scalar_lea.hbm %s1966_s1, 8192 }
   0x4   :  { %s33_s25 = sshll.u32 %s1801_s24, 4  ;;  %p1684_p0 = scmp.ne.s32.totalorder %s1966_s1, %s1683_s28  ;;  %s34_s25 = int_to_ptr.vmem [resolvable:$true] %s33_s25 }
   0x5   :  { %p1687_p1 = scmp.lt.u32.totalorder %s1683_s28, %s1966_s1 }
   0x7   :  { %p1689_p2 = pnand %p1687_p1, %p1684_p0 }
   0x9   :  { %1692 = shalt.err (!%p1689_p2)
}
   0xa   :  { %s1693_s10 = scalar_lea.vmem %s34_s25, 8192  ;;  %p1698_p4 = scmp.lt.s32.totalorder %s34_s25, %s34_s25 }
   0xb   :  { %p1694_p3 = scmp.ne.s32.totalorder %s34_s25, %s1693_s10  ;;  %p1699_p5 = scmp.lt.s32.totalorder %s1693_s10, %s1693_s10 }
   0xd   :  { %p1700_p6 = por %p1699_p5, %p1698_p4 }
   0xf   :  { %p1701_p7 = pnand %p1700_p6, %p1694_p3 }
  0x11   :  { %1704 = shalt.err (!%p1701_p7)
}
  0x12   :  { %s1802_s11 = smov 256   ;;  %s1803_s12 = smov 16  }
  0x13   :  { %39 = dma.hbm_to_vmem [thread:$0]  %s1966_s1, 8192, %s34_s25, [#allocation6], %s1802_s11, %s1802_s11, %s1803_s12  }
  0x14   :  { %s1804_s15 = smov [#allocation2]   ;;  %s1705_s19 = scalar_lea.hbm %s1965_s0, 256 }
  0x15   :  { %s21_s16 = sshll.u32 %s1804_s15, 4  ;;  %p1706_p8 = scmp.ne.s32.totalorder %s1965_s0, %s1705_s19  ;;  %s22_s16 = int_to_ptr.vmem [resolvable:$true] %s21_s16 }
  0x16   :  { %p1709_p9 = scmp.lt.u32.totalorder %s1705_s19, %s1965_s0 }
  0x18   :  { %p1711_p10 = pnand %p1709_p9, %p1706_p8 }
  0x1a   :  { %1714 = shalt.err (!%p1711_p10)
}
  0x1b   :  { %s1715_s24 = scalar_lea.vmem %s22_s16, 256  ;;  %p1720_p12 = scmp.lt.s32.totalorder %s22_s16, %s22_s16 }
  0x1c   :  { %p1716_p11 = scmp.ne.s32.totalorder %s22_s16, %s1715_s24  ;;  %p1721_p13 = scmp.lt.s32.totalorder %s1715_s24, %s1715_s24 }
  0x1e   :  { %p1722_p0 = por %p1721_p13, %p1720_p12 }
  0x20   :  { %p1723_p1 = pnand %p1722_p0, %p1716_p11 }
  0x22   :  { %1726 = shalt.err (!%p1723_p1)
}
  0x23   :  { %s1805_s1 = smov 128   ;;  %s1806_s25 = smov 8  }
  0x24   :  { %27 = dma.hbm_to_vmem [thread:$0]  %s1965_s0, 256, %s22_s16, [#allocation3], %s1805_s1, %s1805_s1, %s1806_s25  }
  0x25   :  { %s1807_s28 = smov [#allocation7]   ;;  %s1808_s30 = smov [#allocation8]  }
  0x26   :  { %s47_s29 = sshll.u32 %s1807_s28, 4  ;;  %s61_s8 = sshll.u32 %s1808_s30, 4  ;;  %s48_s29 = int_to_ptr.vmem [resolvable:$true] %s47_s29  ;;  %s1879_s8 = int_to_ptr.vmem [resolvable:$true] %s61_s8 }
  0x27   :  { %s1727_s11 = scalar_lea.hbm %s1968_s3, 8192 }
  0x28   :  { %p1728_p2 = scmp.ne.s32.totalorder %s1968_s3, %s1727_s11  ;;  %p1731_p3 = scmp.lt.u32.totalorder %s1727_s11, %s1968_s3 }
  0x2a   :  { %p1733_p4 = pnand %p1731_p3, %p1728_p2 }
  0x2c   :  { %1736 = shalt.err (!%p1733_p4)
}
  0x2d   :  { %s1737_s0 = scalar_lea.vmem %s48_s29, 8192  ;;  %p1742_p6 = scmp.lt.s32.totalorder %s48_s29, %s48_s29 }
  0x2e   :  { %p1738_p5 = scmp.ne.s32.totalorder %s48_s29, %s1737_s0  ;;  %p1743_p7 = scmp.lt.s32.totalorder %s1737_s0, %s1737_s0 }
  0x30   :  { %p1744_p8 = por %p1743_p7, %p1742_p6 }
  0x32   :  { %p1745_p9 = pnand %p1744_p8, %p1738_p5 }
  0x34   :  { %1748 = shalt.err (!%p1745_p9)
}
  0x35   :  { %53 = dma.hbm_to_vmem [thread:$0]  %s1968_s3, 8192, %s48_s29, [#allocation6], %s1805_s1, %s1805_s1, %s1806_s25  }
  0x36   :  { %s1749_s20 = scalar_lea.hbm %s1970_s5, 2048 }
  0x37   :  { %p1750_p10 = scmp.ne.s32.totalorder %s1970_s5, %s1749_s20  ;;  %p1753_p11 = scmp.lt.u32.totalorder %s1749_s20, %s1970_s5 }
  0x39   :  { %p1755_p12 = pnand %p1753_p11, %p1750_p10 }
  0x3b   :  { %1758 = shalt.err (!%p1755_p12)
}
  0x3c   :  { %s1759_s26 = scalar_lea.vmem %s1879_s8, 2048  ;;  %p1764_p0 = scmp.lt.s32.totalorder %s1879_s8, %s1879_s8 }
  0x3d   :  { %p1760_p13 = scmp.ne.s32.totalorder %s1879_s8, %s1759_s26  ;;  %p1765_p1 = scmp.lt.s32.totalorder %s1759_s26, %s1759_s26 }
  0x3f   :  { %p1766_p2 = por %p1765_p1, %p1764_p0 }
  0x41   :  { %p1767_p3 = pnand %p1766_p2, %p1760_p13 }
  0x43   :  { %1770 = shalt.err (!%p1767_p3)
}
  0x44   :  { %s1809_s3 = smov 64   ;;  %s1810_s27 = smov 4  }
  0x45   :  { %67 = dma.hbm_to_vmem [thread:$0]  %s1970_s5, 2048, %s1879_s8, [#allocation9], %s1809_s3, %s1809_s3, %s1810_s27  }
  0x46   :  { %1793 = dma.done.wait [#allocation3], 256  }
  0x47   :  { %1794 = vsyncadd [#allocation3], 4294967040 }
  0x48   :  { %1795 = dma.done.wait [#allocation6], 16384  }
  0x49   :  { %1796 = vsyncadd [#allocation6], 4294950912 }
  0x4a   :  { %1797 = dma.done.wait [#allocation9], 2048  }
  0x4b   :  { %1798 = vsyncadd [#allocation9], 4294965248  ;;  %v1472_v0 = vld [vmem:[#allocation5 + $0x4] ss:$16 sps:$4 sm:$0xff]   ;;  %v1474_v1 = vld [vmem:[#allocation5] ss:$16 sps:$4 sm:$0xff]  }
  0x4c   :  { %501 = vmatprep.subr.bf16.mxu1 %v1472_v0  ;;  %v1475_v2 = vld [vmem:[#allocation5 + $0x24] ss:$16 sps:$4 sm:$0xff]   ;;  %v1477_v3 = vld [vmem:[#allocation5 + $0x20] ss:$16 sps:$4 sm:$0xff]   ;;  %v1525_v42 = vld [vmem:[#allocation5 + $0xc] ss:$16 sps:$4 sm:$0xff]  }
  0x4d   :  { %502 = vmatpush1.bf16.msra.mxu1 %v1474_v1  ;;  %v1478_v4 = vld [vmem:[#allocation5 + $0x44] ss:$16 sps:$4 sm:$0xff]   ;;  %v1480_v5 = vld [vmem:[#allocation5 + $0x40] ss:$16 sps:$4 sm:$0xff]   ;;  %v1523_v46 = vld [vmem:[#allocation5 + $0x8] ss:$16 sps:$4 sm:$0xff]  }
  0x4e   :  { %503 = vmatprep.subr.bf16.mxu1 %v1475_v2  ;;  %v1481_v6 = vld [vmem:[#allocation5 + $0x64] ss:$16 sps:$4 sm:$0xff]   ;;  %v1483_v7 = vld [vmem:[#allocation5 + $0x60] ss:$16 sps:$4 sm:$0xff]   ;;  %v1528_v47 = vld [vmem:[#allocation5 + $0x2c] ss:$16 sps:$4 sm:$0xff]  }
  0x4f   :  { %v1484_v8 = vld [vmem:[#allocation5 + $0x84] ss:$16 sps:$4 sm:$0xff]   ;;  %v1486_v9 = vld [vmem:[#allocation5 + $0x80] ss:$16 sps:$4 sm:$0xff]   ;;  %v1526_v50 = vld [vmem:[#allocation5 + $0x28] ss:$16 sps:$4 sm:$0xff]  }
  0x50   :  { %v1487_v10 = vld [vmem:[#allocation5 + $0xa4] ss:$16 sps:$4 sm:$0xff]   ;;  %v1489_v11 = vld [vmem:[#allocation5 + $0xa0] ss:$16 sps:$4 sm:$0xff]   ;;  %v1531_v51 = vld [vmem:[#allocation5 + $0x4c] ss:$16 sps:$4 sm:$0xff]  }
  0x51   :  { %504 = vmatpush1.bf16.msra.mxu1 %v1477_v3  ;;  %v1490_v12 = vld [vmem:[#allocation5 + $0xc4] ss:$16 sps:$4 sm:$0xff]   ;;  %v1492_v14 = vld [vmem:[#allocation5 + $0xc0] ss:$16 sps:$4 sm:$0xff]   ;;  %v1529_v54 = vld [vmem:[#allocation5 + $0x48] ss:$16 sps:$4 sm:$0xff]  }
  0x52   :  { %505 = vmatprep.subr.bf16.mxu1 %v1478_v4  ;;  %v1913_v13 = vld [vmem:[#allocation2 + $0x4] ss:$8 sps:$4 sm:$0xff]   ;;  %v1495_v16 = vld [vmem:[#allocation5 + $0xe0] ss:$16 sps:$4 sm:$0xff]   ;;  %v1571_v26 = vld [vmem:[#allocation7 + $0x4] ss:$8 sps:$4 sm:$0xff]  }
  0x53   :  { %v1493_v15 = vld [vmem:[#allocation5 + $0xe4] ss:$16 sps:$4 sm:$0xff]   ;;  %533 = vmatprep.mubr.bf16.mxu1 %v1913_v13  ;;  %v1498_v18 = vld [vmem:[#allocation5 + $0x100] ss:$16 sps:$4 sm:$0xff]   ;;  %995 = vmatprep.subr.bf16.mxu0 %v1571_v26  ;;  %v1534_v55 = vld [vmem:[#allocation5 + $0x6c] ss:$16 sps:$4 sm:$0xff]  }
  0x54   :  { %v1496_v17 = vld [vmem:[#allocation5 + $0x104] ss:$16 sps:$4 sm:$0xff]   ;;  %v1501_v20 = vld [vmem:[#allocation5 + $0x120] ss:$16 sps:$4 sm:$0xff]   ;;  %v1532_v58 = vld [vmem:[#allocation5 + $0x68] ss:$16 sps:$4 sm:$0xff]  }
  0x55   :  { %506 = vmatpush1.bf16.msra.mxu1 %v1480_v5  ;;  %v1499_v19 = vld [vmem:[#allocation5 + $0x124] ss:$16 sps:$4 sm:$0xff]   ;;  %v1504_v22 = vld [vmem:[#allocation5 + $0x140] ss:$16 sps:$4 sm:$0xff]   ;;  %v1537_v59 = vld [vmem:[#allocation5 + $0x8c] ss:$16 sps:$4 sm:$0xff]  }
  0x56   :  { %507 = vmatprep.subr.bf16.mxu1 %v1481_v6  ;;  %v1502_v21 = vld [vmem:[#allocation5 + $0x144] ss:$16 sps:$4 sm:$0xff]   ;;  %v1507_v24 = vld [vmem:[#allocation5 + $0x160] ss:$16 sps:$4 sm:$0xff]   ;;  %v1535_v62 = vld [vmem:[#allocation5 + $0x88] ss:$16 sps:$4 sm:$0xff]  }
  0x57   :  { %v1505_v23 = vld [vmem:[#allocation5 + $0x164] ss:$16 sps:$4 sm:$0xff]   ;;  %v1573_v27 = vld [vmem:[#allocation7] ss:$8 sps:$4 sm:$0xff]   ;;  %v1576_v31 = vld [vmem:[#allocation7 + $0x10] ss:$8 sps:$4 sm:$0xff]  }
  0x58   :  { %v1508_v25 = vld [vmem:[#allocation5 + $0x184] ss:$16 sps:$4 sm:$0xff]   ;;  %v1510_v28 = vld [vmem:[#allocation5 + $0x180] ss:$16 sps:$4 sm:$0xff]   ;;  %996 = vmatpush1.bf16.msra.mxu0 %v1573_v27  ;;  %v1540_v63 = vld [vmem:[#allocation5 + $0xac] ss:$16 sps:$4 sm:$0xff]  }
  0x59   :  { %508 = vmatpush1.bf16.msra.mxu1 %v1483_v7  ;;  %v1574_v29 = vld [vmem:[#allocation7 + $0x14] ss:$8 sps:$4 sm:$0xff]   ;;  %v1577_v32 = vld [vmem:[#allocation7 + $0x24] ss:$8 sps:$4 sm:$0xff]   ;;  %v1513_v33 = vld [vmem:[#allocation5 + $0x1a0] ss:$16 sps:$4 sm:$0xff]  }
  0x5a   :  { %509 = vmatprep.subr.bf16.mxu1 %v1484_v8  ;;  %v1511_v30 = vld [vmem:[#allocation5 + $0x1a4] ss:$16 sps:$4 sm:$0xff]   ;;  %997 = vmatprep.subr.bf16.mxu0 %v1574_v29  ;;  %v1579_v35 = vld [vmem:[#allocation7 + $0x20] ss:$8 sps:$4 sm:$0xff]   ;;  %v1582_v39 = vld [vmem:[#allocation7 + $0x30] ss:$8 sps:$4 sm:$0xff]  }
  0x5b   :  { %v1514_v34 = vld [vmem:[#allocation5 + $0x1c4] ss:$16 sps:$4 sm:$0xff]   ;;  %v1516_v37 = vld [vmem:[#allocation5 + $0x1c0] ss:$16 sps:$4 sm:$0xff]   ;;  %v1538_v2 = vld [vmem:[#allocation5 + $0xa8] ss:$16 sps:$4 sm:$0xff]  }
  0x5c   :  { %998 = vmatpush1.bf16.msra.mxu0 %v1576_v31  ;;  %v1580_v36 = vld [vmem:[#allocation7 + $0x34] ss:$8 sps:$4 sm:$0xff]   ;;  %v1583_v40 = vld [vmem:[#allocation7 + $0x44] ss:$8 sps:$4 sm:$0xff]   ;;  %v1519_v41 = vld [vmem:[#allocation5 + $0x1e0] ss:$16 sps:$4 sm:$0xff]  }
  0x5d   :  { %510 = vmatpush1.bf16.msra.mxu1 %v1486_v9  ;;  %999 = vmatprep.subr.bf16.mxu0 %v1577_v32  ;;  %v1517_v38 = vld [vmem:[#allocation5 + $0x1e4] ss:$16 sps:$4 sm:$0xff]   ;;  %v1585_v43 = vld [vmem:[#allocation7 + $0x40] ss:$8 sps:$4 sm:$0xff]   ;;  %v1916_v44 = vld [vmem:[#allocation2] ss:$8 sps:$4 sm:$0xff]  }
  0x5e   :  { %511 = vmatprep.subr.bf16.mxu1 %v1487_v10  ;;  %v1586_v45 = vld [vmem:[#allocation7 + $0x54] ss:$8 sps:$4 sm:$0xff]   ;;  %v1588_v48 = vld [vmem:[#allocation7 + $0x50] ss:$8 sps:$4 sm:$0xff]   ;;  %v1589_v49 = vld [vmem:[#allocation7 + $0x64] ss:$8 sps:$4 sm:$0xff]  }
  0x5f   :  { %v1591_v52 = vld [vmem:[#allocation7 + $0x60] ss:$8 sps:$4 sm:$0xff]   ;;  %v1592_v53 = vld [vmem:[#allocation7 + $0x74] ss:$8 sps:$4 sm:$0xff]   ;;  %v1594_v56 = vld [vmem:[#allocation7 + $0x70] ss:$8 sps:$4 sm:$0xff]  }
  0x60   :  { %1000 = vmatpush1.bf16.msra.mxu0 %v1579_v35  ;;  %v1595_v57 = vld [vmem:[#allocation7 + $0x84] ss:$8 sps:$4 sm:$0xff]   ;;  %v1597_v60 = vld [vmem:[#allocation7 + $0x80] ss:$8 sps:$4 sm:$0xff]   ;;  %v1598_v61 = vld [vmem:[#allocation7 + $0x94] ss:$8 sps:$4 sm:$0xff]  }
  0x61   :  { %512 = vmatpush1.bf16.msra.mxu1 %v1489_v11  ;;  %1001 = vmatprep.subr.bf16.mxu0 %v1580_v36  ;;  %v1600_v0 = vld [vmem:[#allocation7 + $0x90] ss:$8 sps:$4 sm:$0xff]   ;;  %v1601_v1 = vld [vmem:[#allocation7 + $0xa4] ss:$8 sps:$4 sm:$0xff]   ;;  %v1603_v4 = vld [vmem:[#allocation7 + $0xa0] ss:$8 sps:$4 sm:$0xff]  }
  0x62   :  { %513 = vmatprep.subr.bf16.mxu1 %v1490_v12  ;;  %v1543_v3 = vld [vmem:[#allocation5 + $0xcc] ss:$16 sps:$4 sm:$0xff]   ;;  %v1541_v6 = vld [vmem:[#allocation5 + $0xc8] ss:$16 sps:$4 sm:$0xff]   ;;  %v1667_v35 = vld [vmem:[#allocation8 + $0x40] sm:$0xff]   ;;  %s1811_s10 = smov [#allocation10]  }
  0x63   :  { %v1604_v5 = vld [vmem:[#allocation7 + $0xb4] ss:$8 sps:$4 sm:$0xff]   ;;  %v1606_v8 = vld [vmem:[#allocation7 + $0xb0] ss:$8 sps:$4 sm:$0xff]   ;;  %v1607_v9 = vld [vmem:[#allocation7 + $0xc4] ss:$8 sps:$4 sm:$0xff]  }
  0x64   :  { %1002 = vmatpush1.bf16.msra.mxu0 %v1582_v39  ;;  %v1546_v7 = vld [vmem:[#allocation5 + $0xec] ss:$16 sps:$4 sm:$0xff]   ;;  %v1544_v10 = vld [vmem:[#allocation5 + $0xe8] ss:$16 sps:$4 sm:$0xff]   ;;  %v1668_v36 = vld [vmem:[#allocation8] sm:$0xff]   ;;  %s1270_s11 = sshll.u32 %s1811_s10, 4  ;;  %s1271_s11 = int_to_ptr.vmem [resolvable:$true] %s1270_s11 }
  0x65   :  { %514 = vmatpush1.bf16.msra.mxu1 %v1492_v14  ;;  %1003 = vmatprep.subr.bf16.mxu0 %v1583_v40  ;;  %v1549_v11 = vld [vmem:[#allocation5 + $0x10c] ss:$16 sps:$4 sm:$0xff]   ;;  %v1609_v12 = vld [vmem:[#allocation7 + $0xc0] ss:$8 sps:$4 sm:$0xff]   ;;  %v1612_v29 = vld [vmem:[#allocation7 + $0xd0] ss:$8 sps:$4 sm:$0xff]   ;;  %p1776_p5 = scmp.lt.s32.totalorder %s1271_s11, %s1271_s11 }
  0x66   :  { %515 = vmatprep.subr.bf16.mxu1 %v1493_v15  ;;  %v1547_v14 = vld [vmem:[#allocation5 + $0x108] ss:$16 sps:$4 sm:$0xff]   ;;  %v1552_v15 = vld [vmem:[#allocation5 + $0x12c] ss:$16 sps:$4 sm:$0xff]   ;;  %v1671_v39 = vld [vmem:[#allocation8 + $0x50] sm:$0xff]   ;;  %s1771_s12 = scalar_lea.vmem %s1271_s11, 256 }
  0x67   :  { %v1565_v26 = vld [vmem:[#allocation5 + $0x1c8] ss:$16 sps:$4 sm:$0xff]   ;;  %v1570_v27 = vld [vmem:[#allocation5 + $0x1ec] ss:$16 sps:$4 sm:$0xff]   ;;  %v1672_v40 = vld [vmem:[#allocation8 + $0x10] sm:$0xff]   ;;  %p1772_p4 = scmp.ne.s32.totalorder %s1271_s11, %s1771_s12  ;;  %p1777_p6 = scmp.lt.s32.totalorder %s1771_s12, %s1771_s12 }
  0x68   :  { %1004 = vmatpush1.bf16.msra.mxu0 %v1585_v43  ;;  %v1615_v31 = vld [vmem:[#allocation7 + $0xe0] ss:$8 sps:$4 sm:$0xff]   ;;  %v1616_v32 = vld [vmem:[#allocation7 + $0xf4] ss:$8 sps:$4 sm:$0xff]  }
  0x69   :  { %516 = vmatpush1.bf16.msra.mxu1 %v1495_v16  ;;  %1005 = vmatprep.subr.bf16.mxu0 %v1586_v45  ;;  %v1550_v16 = vld [vmem:[#allocation5 + $0x128] ss:$16 sps:$4 sm:$0xff]   ;;  %v1675_v43 = vld [vmem:[#allocation8 + $0x60] sm:$0xff]   ;;  %p1778_p7 = por %p1777_p6, %p1776_p5 }
  0x6a   :  { %517 = vmatprep.subr.bf16.mxu1 %v1496_v17  ;;  %v1555_v17 = vld [vmem:[#allocation5 + $0x14c] ss:$16 sps:$4 sm:$0xff]  }
  0x6b   :  { %v1677_v45 = vld [vmem:[#allocation8 + $0x68] sm:$0xff]   ;;  %p1779_p8 = pnand %p1778_p7, %p1772_p4 }
  0x6c   :  { %1006 = vmatpush1.bf16.msra.mxu0 %v1588_v48 }
  0x6d   :  { %518 = vmatpush1.bf16.msra.mxu1 %v1498_v18  ;;  %1007 = vmatprep.subr.bf16.mxu0 %v1589_v49  ;;  %v1553_v18 = vld [vmem:[#allocation5 + $0x148] ss:$16 sps:$4 sm:$0xff]   ;;  %v1927_v49 = vld [vmem:[%s1967_s2] sm:$0xf] }
  0x6e   :  { %519 = vmatprep.subr.bf16.mxu1 %v1499_v19  ;;  %v1558_v19 = vld [vmem:[#allocation5 + $0x16c] ss:$16 sps:$4 sm:$0xff]  }
  0x70   :  { %1008 = vmatpush1.bf16.msra.mxu0 %v1591_v52 }
  0x71   :  { %520 = vmatpush1.bf16.msra.mxu1 %v1501_v20  ;;  %1009 = vmatprep.subr.bf16.mxu0 %v1592_v53  ;;  %v1556_v20 = vld [vmem:[#allocation5 + $0x168] ss:$16 sps:$4 sm:$0xff]  }
  0x72   :  { %521 = vmatprep.subr.bf16.mxu1 %v1502_v21  ;;  %v1561_v21 = vld [vmem:[#allocation5 + $0x18c] ss:$16 sps:$4 sm:$0xff]  }
  0x74   :  { %1010 = vmatpush1.bf16.msra.mxu0 %v1594_v56 }
  0x75   :  { %522 = vmatpush1.bf16.msra.mxu1 %v1504_v22  ;;  %1011 = vmatprep.subr.bf16.mxu0 %v1595_v57  ;;  %v1559_v22 = vld [vmem:[#allocation5 + $0x188] ss:$16 sps:$4 sm:$0xff]  }
  0x76   :  { %523 = vmatprep.subr.bf16.mxu1 %v1505_v23  ;;  %v1564_v23 = vld [vmem:[#allocation5 + $0x1ac] ss:$16 sps:$4 sm:$0xff]  }
  0x78   :  { %1012 = vmatpush1.bf16.msra.mxu0 %v1597_v60 }
  0x79   :  { %524 = vmatpush1.bf16.msra.mxu1 %v1507_v24  ;;  %1013 = vmatprep.subr.bf16.mxu0 %v1598_v61  ;;  %v1562_v24 = vld [vmem:[#allocation5 + $0x1a8] ss:$16 sps:$4 sm:$0xff]  }
  0x7a   :  { %525 = vmatprep.subr.bf16.mxu1 %v1508_v25  ;;  %v1567_v25 = vld [vmem:[#allocation5 + $0x1cc] ss:$16 sps:$4 sm:$0xff]  }
  0x7c   :  { %1014 = vmatpush1.bf16.msra.mxu0 %v1600_v0 }
  0x7d   :  { %526 = vmatpush1.bf16.msra.mxu1 %v1510_v28  ;;  %1015 = vmatprep.subr.bf16.mxu0 %v1601_v1  ;;  %v1568_v28 = vld [vmem:[#allocation5 + $0x1e8] ss:$16 sps:$4 sm:$0xff]  }
  0x7e   :  { %527 = vmatprep.subr.bf16.mxu1 %v1511_v30  ;;  %v1613_v30 = vld [vmem:[#allocation7 + $0xe4] ss:$8 sps:$4 sm:$0xff]  }
  0x80   :  { %1016 = vmatpush1.bf16.msra.mxu0 %v1603_v4  ;;  %v1624_v4 = vld [vmem:[#allocation7 + $0x114] ss:$8 sps:$4 sm:$0xff]  }
  0x81   :  { %528 = vmatpush1.bf16.msra.mxu1 %v1513_v33  ;;  %1017 = vmatprep.subr.bf16.mxu0 %v1604_v5  ;;  %v1618_v33 = vld [vmem:[#allocation7 + $0xf0] ss:$8 sps:$4 sm:$0xff]  }
  0x82   :  { %529 = vmatprep.subr.bf16.mxu1 %v1514_v34  ;;  %v1621_v34 = vld [vmem:[#allocation7 + $0x104] ss:$8 sps:$4 sm:$0xff]   ;;  %v1622_v5 = vld [vmem:[#allocation7 + $0x110] ss:$8 sps:$4 sm:$0xff]  }
  0x84   :  { %1018 = vmatpush1.bf16.msra.mxu0 %v1606_v8  ;;  %v1630_v8 = vld [vmem:[#allocation7 + $0x134] ss:$8 sps:$4 sm:$0xff]  }
  0x85   :  { %530 = vmatpush1.bf16.msra.mxu1 %v1516_v37  ;;  %1019 = vmatprep.subr.bf16.mxu0 %v1607_v9  ;;  %v1669_v37 = vld [vmem:[#allocation8 + $0x48] sm:$0xff]   ;;  %v1628_v9 = vld [vmem:[#allocation7 + $0x130] ss:$8 sps:$4 sm:$0xff]  }
  0x86   :  { %531 = vmatprep.subr.bf16.mxu1 %v1517_v38  ;;  %v1670_v38 = vld [vmem:[#allocation8 + $0x8] sm:$0xff]  }
  0x88   :  { %1020 = vmatpush1.bf16.msra.mxu0 %v1609_v12  ;;  %v1636_v12 = vld [vmem:[#allocation7 + $0x154] ss:$8 sps:$4 sm:$0xff]  }
  0x89   :  { %532 = vmatpush1.bf16.msra.mxu1 %v1519_v41  ;;  %v1673_v41 = vld [vmem:[#allocation8 + $0x58] sm:$0xff]  }
  0x8a   :  { %544 = vmatprep.subr.bf16.mxu1 %v1525_v42  ;;  %v1674_v42 = vld [vmem:[#allocation8 + $0x18] sm:$0xff]  }
  0x8c   :  { %534 = vmatmul.mubr.bf16.vlgmr.msra.gmra.mrb[0].mxu1 %v1916_v44 }
  0x8d   :  { %545 = vmatpush1.bf16.msra.mxu1 %v1523_v46  ;;  %576 = vmatprep.mubr.bf16.mxu1 %v1913_v13  ;;  %v1610_v13 = vld [vmem:[#allocation7 + $0xd4] ss:$8 sps:$4 sm:$0xff]   ;;  %v151_v46 = vlaneseq }
  0x8e   :  { %546 = vmatprep.subr.bf16.mxu1 %v1528_v47  ;;  %1021 = vmatprep.subr.bf16.mxu0 %v1610_v13  ;;  %v1634_v13 = vld [vmem:[#allocation7 + $0x150] ss:$8 sps:$4 sm:$0xff]  }
  0x8f   :  { %1022 = vmatpush1.bf16.msra.mxu0 %v1612_v29  ;;  %v1921_v47 = vshrl.u32 %v151_v46, 7 }
  0x90   :  { %1023 = vmatprep.subr.bf16.mxu0 %v1613_v30 }
  0x91   :  { %547 = vmatpush1.bf16.msra.mxu1 %v1526_v50  ;;  %v153_v48 = vsub.s32 0, %v1921_v47  ;;  %v157_v50 = vsub.s32 1, %v1921_v47  ;;  %v161_v29 = vsub.s32 2, %v1921_v47  ;;  %v165_v30 = vsub.s32 3, %v1921_v47  ;;  %v1414_v47 = vld [vmem:[%s1971_s6] ss:$0 sm:$0xff] }
  0x92   :  { %548 = vmatprep.subr.bf16.mxu1 %v1531_v51 }
  0x93   :  { %1024 = vmatpush1.bf16.msra.mxu0 %v1615_v31  ;;  %v154_v51 = vrot.slane %v1927_v49, %v153_v48  ;;  %v158_v52 = vrot.slane %v1927_v49, %v157_v50  ;;  %v1658_v31 = vld [vmem:[#allocation7 + $0x1d0] ss:$8 sps:$4 sm:$0xff]  }
  0x94   :  { %1025 = vmatprep.subr.bf16.mxu0 %v1616_v32  ;;  %v162_v32 = vrot.slane %v1927_v49, %v161_v29 }
  0x95   :  { %549 = vmatpush1.bf16.msra.mxu1 %v1529_v54 }
  0x96   :  { %550 = vmatprep.subr.bf16.mxu1 %v1534_v55 }
  0x97   :  { %1026 = vmatpush1.bf16.msra.mxu0 %v1618_v33  ;;  %v1663_v33 = vld [vmem:[#allocation7 + $0x1e4] ss:$8 sps:$4 sm:$0xff]  }
  0x98   :  { %1038 = vmatprep.subr.bf16.mxu0 %v1621_v34  ;;  %v166_v34 = vrot.slane %v1927_v49, %v165_v30 }
  0x99   :  { %551 = vmatpush1.bf16.msra.mxu1 %v1532_v58 }
  0x9a   :  { %552 = vmatprep.subr.bf16.mxu1 %v1537_v59 }
  0x9d   :  { %553 = vmatpush1.bf16.msra.mxu1 %v1535_v62 }
  0x9e   :  { %554 = vmatprep.subr.bf16.mxu1 %v1540_v63 }
  0xa1   :  { %555 = vmatpush1.bf16.msra.mxu1 %v1538_v2 }
  0xa2   :  { %556 = vmatprep.subr.bf16.mxu1 %v1543_v3  ;;  %v1619_v3 = vld [vmem:[#allocation7 + $0x100] ss:$8 sps:$4 sm:$0xff]  }
  0xa5   :  { %557 = vmatpush1.bf16.msra.mxu1 %v1541_v6  ;;  %v1627_v6 = vld [vmem:[#allocation7 + $0x124] ss:$8 sps:$4 sm:$0xff]  }
  0xa6   :  { %558 = vmatprep.subr.bf16.mxu1 %v1546_v7  ;;  %v1625_v7 = vld [vmem:[#allocation7 + $0x120] ss:$8 sps:$4 sm:$0xff]  }
  0xa9   :  { %559 = vmatpush1.bf16.msra.mxu1 %v1544_v10  ;;  %v1633_v10 = vld [vmem:[#allocation7 + $0x144] ss:$8 sps:$4 sm:$0xff]  }
  0xaa   :  { %560 = vmatprep.subr.bf16.mxu1 %v1549_v11  ;;  %v1631_v11 = vld [vmem:[#allocation7 + $0x140] ss:$8 sps:$4 sm:$0xff]  }
  0xad   :  { %561 = vmatpush1.bf16.msra.mxu1 %v1547_v14  ;;  %v1639_v14 = vld [vmem:[#allocation7 + $0x164] ss:$8 sps:$4 sm:$0xff]  }
  0xae   :  { %562 = vmatprep.subr.bf16.mxu1 %v1552_v15  ;;  %v1637_v15 = vld [vmem:[#allocation7 + $0x160] ss:$8 sps:$4 sm:$0xff]  }
  0xb1   :  { %563 = vmatpush1.bf16.msra.mxu1 %v1550_v16  ;;  %v1642_v16 = vld [vmem:[#allocation7 + $0x174] ss:$8 sps:$4 sm:$0xff]  }
  0xb2   :  { %564 = vmatprep.subr.bf16.mxu1 %v1555_v17  ;;  %v1640_v17 = vld [vmem:[#allocation7 + $0x170] ss:$8 sps:$4 sm:$0xff]  }
  0xb5   :  { %565 = vmatpush1.bf16.msra.mxu1 %v1553_v18  ;;  %v1645_v18 = vld [vmem:[#allocation7 + $0x184] ss:$8 sps:$4 sm:$0xff]  }
  0xb6   :  { %566 = vmatprep.subr.bf16.mxu1 %v1558_v19  ;;  %v1643_v19 = vld [vmem:[#allocation7 + $0x180] ss:$8 sps:$4 sm:$0xff]  }
  0xb9   :  { %567 = vmatpush1.bf16.msra.mxu1 %v1556_v20  ;;  %v1648_v20 = vld [vmem:[#allocation7 + $0x194] ss:$8 sps:$4 sm:$0xff]  }
  0xba   :  { %568 = vmatprep.subr.bf16.mxu1 %v1561_v21  ;;  %v1646_v21 = vld [vmem:[#allocation7 + $0x190] ss:$8 sps:$4 sm:$0xff]  }
  0xbd   :  { %569 = vmatpush1.bf16.msra.mxu1 %v1559_v22  ;;  %v1651_v22 = vld [vmem:[#allocation7 + $0x1a4] ss:$8 sps:$4 sm:$0xff]  }
  0xbe   :  { %570 = vmatprep.subr.bf16.mxu1 %v1564_v23  ;;  %v1649_v23 = vld [vmem:[#allocation7 + $0x1a0] ss:$8 sps:$4 sm:$0xff]  }
  0xc1   :  { %571 = vmatpush1.bf16.msra.mxu1 %v1562_v24  ;;  %v1654_v24 = vld [vmem:[#allocation7 + $0x1b4] ss:$8 sps:$4 sm:$0xff]  }
  0xc2   :  { %572 = vmatprep.subr.bf16.mxu1 %v1567_v25  ;;  %v1652_v25 = vld [vmem:[#allocation7 + $0x1b0] ss:$8 sps:$4 sm:$0xff]  }
  0xc5   :  { %573 = vmatpush1.bf16.msra.mxu1 %v1565_v26  ;;  %v1657_v26 = vld [vmem:[#allocation7 + $0x1c4] ss:$8 sps:$4 sm:$0xff]  }
  0xc6   :  { %574 = vmatprep.subr.bf16.mxu1 %v1570_v27  ;;  %v1655_v27 = vld [vmem:[#allocation7 + $0x1c0] ss:$8 sps:$4 sm:$0xff]  }
  0xc9   :  { %575 = vmatpush1.bf16.msra.mxu1 %v1568_v28  ;;  %v1660_v28 = vld [vmem:[#allocation7 + $0x1d4] ss:$8 sps:$4 sm:$0xff]  }
  0xca   :  { %1431 = vmatprep.subr.bf16.mxu1 %v1667_v35 }
  0xcc   :  { %577 = vmatmul.mubr.bf16.vlgmr.msra.gmra.mrb[4].mxu1 %v1916_v44  ;;  %v1676_v44 = vld [vmem:[#allocation8 + $0x20] sm:$0xff]  }
  0xcd   :  { %1432 = vmatpush3.bf16.msra.mxu1 %v1668_v36  ;;  %v1661_v36 = vld [vmem:[#allocation7 + $0x1e0] ss:$8 sps:$4 sm:$0xff]  }
  0xce   :  { %1433 = vmatprep.subr.bf16.mxu1 %v1669_v37 }
  0xd1   :  { %1434 = vmatpush3.bf16.msra.mxu1 %v1670_v38 }
  0xd2   :  { %1435 = vmatprep.subr.bf16.mxu1 %v1671_v39  ;;  %v1666_v39 = vld [vmem:[#allocation7 + $0x1f4] ss:$8 sps:$4 sm:$0xff]  }
  0xd5   :  { %1436 = vmatpush3.bf16.msra.mxu1 %v1672_v40 }
  0xd6   :  { %1437 = vmatprep.subr.bf16.mxu1 %v1673_v41 }
  0xd9   :  { %1438 = vmatpush3.bf16.msra.mxu1 %v1674_v42 }
  0xda   :  { %1439 = vmatprep.subr.bf16.mxu1 %v1675_v43 }
  0xdd   :  { %1440 = vmatpush3.bf16.msra.mxu1 %v1676_v44 }
  0xde   :  { %1441 = vmatprep.subr.bf16.mxu1 %v1677_v45  ;;  %v1664_v45 = vld [vmem:[#allocation7 + $0x1f0] ss:$8 sps:$4 sm:$0xff]  }
 0x15f   :  { %v535_v53 = vpop.f32.mrb[0].mxu1 }
 0x160   :  { %v536_v54 = vadd.f32 %v535_v53, %v154_v51  ;;  %v537_v55 = vpop.f32.mrb[1].mxu1 }
 0x161   :  { %v538_v56 = vadd.f32 %v537_v55, %v158_v52  ;;  %v539_v57 = vpop.f32.mrb[2].mxu1  ;;  %v1678_v55 = vld [vmem:[#allocation8 + $0x28] sm:$0xff]  }
 0x162   :  { %v587_v58 = vmax.f32 %v536_v54, 0.0  ;;  %v540_v59 = vadd.f32 %v539_v57, %v154_v51  ;;  %v541_v60 = vpop.f32.mrb[3].mxu1  ;;  %1442 = vmatpush3.bf16.msra.mxu1 %v1678_v55  ;;  %v1680_v57 = vld [vmem:[#allocation8 + $0x30] sm:$0xff]  }
 0x163   :  { %v542_v61 = vadd.f32 %v541_v60, %v158_v52  ;;  %v588_v63 = vmax.f32 %v538_v56, 0.0  ;;  %v1679_v56 = vld [vmem:[#allocation8 + $0x70] sm:$0xff]  }
 0x164   :  { %v591_v62 = vmax.f32 %v540_v59, 0.0  ;;  %1443 = vmatprep.subr.bf16.mxu1 %v1679_v56  ;;  %v1682_v59 = vld [vmem:[#allocation8 + $0x38] sm:$0xff]   ;;  %v663_v60 = vld [vmem:[%s1969_s4] sm:$0x3] }
 0x165   :  { %v592_v0 = vmax.f32 %v542_v61, 0.0  ;;  %v668_v61 = vrot.slane %v663_v60, %v153_v48 }
 0x166   :  { %v595_v1 = vpack.c.bf16 %v591_v62, %v587_v58  ;;  %1444 = vmatpush3.bf16.msra.mxu1 %v1680_v57  ;;  %v1681_v58 = vld [vmem:[#allocation8 + $0x78] sm:$0xff]   ;;  %v672_v62 = vrot.slane %v663_v60, %v157_v50 }
 0x167   :  { %v596_v2 = vpack.c.bf16 %v592_v0, %v588_v63  ;;  %1445 = vmatprep.subr.bf16.mxu1 %v1681_v58 }
 0x169   :  { %1027 = vmatprep.mubr.bf16.mxu0 %v596_v2 }
 0x16a   :  { %1028 = vmatmul.mubr.bf16.vlgmr.msra.gmra.mrb[0].mxu0 %v595_v1  ;;  %1446 = vmatpush3.bf16.msra.mxu1 %v1682_v59 }
 0x16b   :  { %1039 = vmatpush1.bf16.msra.mxu0 %v1619_v3 }
 0x16c   :  { %1040 = vmatprep.subr.bf16.mxu0 %v1624_v4 }
 0x16f   :  { %1041 = vmatpush1.bf16.msra.mxu0 %v1622_v5 }
 0x170   :  { %1042 = vmatprep.subr.bf16.mxu0 %v1627_v6 }
 0x173   :  { %1043 = vmatpush1.bf16.msra.mxu0 %v1625_v7 }
 0x174   :  { %1044 = vmatprep.subr.bf16.mxu0 %v1630_v8 }
 0x177   :  { %1045 = vmatpush1.bf16.msra.mxu0 %v1628_v9 }
 0x178   :  { %1046 = vmatprep.subr.bf16.mxu0 %v1633_v10 }
 0x17b   :  { %1047 = vmatpush1.bf16.msra.mxu0 %v1631_v11 }
 0x17c   :  { %1048 = vmatprep.subr.bf16.mxu0 %v1636_v12 }
 0x17f   :  { %1049 = vmatpush1.bf16.msra.mxu0 %v1634_v13 }
 0x180   :  { %1050 = vmatprep.subr.bf16.mxu0 %v1639_v14 }
 0x183   :  { %1051 = vmatpush1.bf16.msra.mxu0 %v1637_v15 }
 0x184   :  { %1052 = vmatprep.subr.bf16.mxu0 %v1642_v16 }
 0x187   :  { %1053 = vmatpush1.bf16.msra.mxu0 %v1640_v17 }
 0x188   :  { %1054 = vmatprep.subr.bf16.mxu0 %v1645_v18 }
 0x18b   :  { %1055 = vmatpush1.bf16.msra.mxu0 %v1643_v19 }
 0x18c   :  { %1056 = vmatprep.subr.bf16.mxu0 %v1648_v20 }
 0x18f   :  { %1057 = vmatpush1.bf16.msra.mxu0 %v1646_v21 }
 0x190   :  { %1058 = vmatprep.subr.bf16.mxu0 %v1651_v22 }
 0x193   :  { %1059 = vmatpush1.bf16.msra.mxu0 %v1649_v23 }
 0x194   :  { %1060 = vmatprep.subr.bf16.mxu0 %v1654_v24 }
 0x197   :  { %1061 = vmatpush1.bf16.msra.mxu0 %v1652_v25 }
 0x198   :  { %1062 = vmatprep.subr.bf16.mxu0 %v1657_v26 }
 0x19b   :  { %1063 = vmatpush1.bf16.msra.mxu0 %v1655_v27 }
 0x19c   :  { %1064 = vmatprep.subr.bf16.mxu0 %v1660_v28 }
 0x19f   :  { %v578_v35 = vpop.f32.mrb[4].mxu1  ;;  %1065 = vmatpush1.bf16.msra.mxu0 %v1658_v31 }
 0x1a0   :  { %v579_v37 = vadd.f32 %v578_v35, %v162_v32  ;;  %v580_v38 = vpop.f32.mrb[5].mxu1  ;;  %1066 = vmatprep.subr.bf16.mxu0 %v1663_v33 }
 0x1a1   :  { %v581_v40 = vadd.f32 %v580_v38, %v166_v34  ;;  %v582_v41 = vpop.f32.mrb[6].mxu1 }
 0x1a2   :  { %v583_v42 = vadd.f32 %v582_v41, %v162_v32  ;;  %v584_v43 = vpop.f32.mrb[7].mxu1  ;;  %v589_v46 = vmax.f32 %v579_v37, 0.0 }
 0x1a3   :  { %v585_v44 = vadd.f32 %v584_v43, %v166_v34  ;;  %1067 = vmatpush1.bf16.msra.mxu0 %v1661_v36  ;;  %v590_v52 = vmax.f32 %v581_v40, 0.0 }
 0x1a4   :  { %v593_v51 = vmax.f32 %v583_v42, 0.0  ;;  %1068 = vmatprep.subr.bf16.mxu0 %v1666_v39 }
 0x1a5   :  { %v594_v53 = vmax.f32 %v585_v44, 0.0 }
 0x1a6   :  { %v597_v49 = vpack.c.bf16 %v593_v51, %v589_v46 }
 0x1a7   :  { %v598_v54 = vpack.c.bf16 %v594_v53, %v590_v52  ;;  %1069 = vmatpush1.bf16.msra.mxu0 %v1664_v45 }
 0x1a9   :  { %1070 = vmatprep.mubr.bf16.mxu0 %v598_v54 }
 0x1aa   :  { %1071 = vmatmul.mubr.bf16.vlgmr.msra.gmra.mrb[0].mxu0 %v597_v49 }
 0x27d   :  { %v1072_v63 = vpop.f32.mrb[0].mxu0 }
 0x27e   :  { %v1453_v0 = vadd.f32 %v1072_v63, %v668_v61  ;;  %v1074_v1 = vpop.f32.mrb[1].mxu0 }
 0x27f   :  { %v1454_v2 = vadd.f32 %v1074_v1, %v672_v62  ;;  %v1076_v3 = vpop.f32.mrb[2].mxu0 }
 0x280   :  { %v1455_v4 = vadd.f32 %v1076_v3, %v668_v61  ;;  %v1078_v5 = vpop.f32.mrb[3].mxu0  ;;  %v1081_v7 = vmax.f32 %v1453_v0, 0.0 }
 0x281   :  { %v1456_v6 = vadd.f32 %v1078_v5, %v672_v62  ;;  %v1082_v9 = vmax.f32 %v1454_v2, 0.0 }
 0x282   :  { %v1083_v8 = vmax.f32 %v1455_v4, 0.0 }
 0x283   :  { %v1084_v10 = vmax.f32 %v1456_v6, 0.0 }
 0x284   :  { %v1085_v11 = vpack.c.bf16 %v1083_v8, %v1081_v7 }
 0x285   :  { %v1086_v12 = vpack.c.bf16 %v1084_v10, %v1082_v9 }
 0x287   :  { %1254 = vmatprep.mubr.bf16.mxu1 %v1086_v12 }
 0x288   :  { %1255 = vmatmul.mubr.bf16.vlgmr.msra.gmra.mrb[8].mxu1 %v1085_v11 }
 0x35b   :  { %v1447_v48 = vpop.f32.mrb[8].mxu1 }
 0x35c   :  { %v1448_v50 = vpop.f32.mrb[9].mxu1 }
 0x35d   :  { %v1449_v13 = vadd.f32 %v1448_v50, %v1447_v48  ;;  %v1450_v14 = vpop.f32.mrb[10].mxu1 }
 0x35e   :  { %v1451_v15 = vpop.f32.mrb[11].mxu1 }
 0x35f   :  { %v1257_v16 = vadd.f32 %v1449_v13, %v1414_v47  ;;  %v1452_v17 = vadd.f32 %v1451_v15, %v1450_v14 }
 0x361   :  { %1263 = vst [vmem:[#allocation10] sm:$0xff] %v1257_v16  ;;  %v1260_v18 = vadd.f32 %v1452_v17, %v1414_v47 }
 0x363   :  { %1264 = vst [vmem:[#allocation10 + $0x8] sm:$0xff] %v1260_v18 }
 0x364   :  { %1782 = shalt.err (!%p1779_p8)
}
 0x365   :  { %s1783_s14 = scalar_lea.hbm %s1972_s7, 256 }
 0x366   :  { %p1784_p9 = scmp.ne.s32.totalorder %s1972_s7, %s1783_s14  ;;  %p1787_p10 = scmp.lt.u32.totalorder %s1783_s14, %s1972_s7 }
 0x368   :  { %p1789_p11 = pnand %p1787_p10, %p1784_p9 }
 0x36a   :  { %1792 = shalt.err (!%p1789_p11)
}
 0x36b   :  { %1276 = dma.vmem_to_hbm [thread:$0]  %s1271_s11, 256, %s1972_s7, [#allocation4], %s1805_s1, %s1805_s1, %s1806_s25  }
 0x36c   :  { %1799 = dma.done.wait [#allocation4], 256  }
 0x36d   :  { %1800 = vsyncadd [#allocation4], 4294967040 }
 0x36e   :  { %1280 = vsyncpa [#allocation3], 1 }
 0x36f   :  { %1281 = vsyncpa [#allocation6], 1 }
 0x370   :  { %1282 = vsyncpa [#allocation9], 1 }
 0x371   :  { %1283 = vsyncpa [#allocation4], 1 }

</bundles_post_ra>
